<compile_context>
chip_gen: v7x
topology: tpu7x:2x2x1
jax: 0.10.0
libtpu: 0.0.40
codegen_flags: <defaults>
</compile_context>

<pallas_src>
import functools

import jax
import jax.numpy as jnp
from jax import lax
from jax.experimental import pallas as pl
from jax.experimental.pallas import tpu as pltpu


def _batch_hard_kernel(emb_row_ref, emb_col_ref, spk_row_ref, spk_col_ref,
                       out_ref, post_ref, nega_ref, *, margin):
    j = pl.program_id(1)

    @pl.when(j == 0)
    def _init():
        post_ref[...] = jnp.zeros_like(post_ref)
        nega_ref[...] = jnp.full_like(nega_ref, jnp.inf)

    xr = emb_row_ref[...]                       # (TM, D), native dtype -> MXU
    xc = emb_col_ref[...]                       # (TN, D), native dtype -> MXU

    # gram[i,j] = e_i . e_j  (contract feature dim of both operands, no transpose)
    dn = (((1,), (1,)), ((), ()))
    gram = lax.dot_general(xr, xc, dn, preferred_element_type=jnp.float32)   # (TM, TN)

    # Squared norms in f32: lane reduction for the row form, tiny ones-matmul
    # for the (1, TN) column form (avoids an in-kernel transpose).
    xr32 = xr.astype(jnp.float32)
    xc32 = xc.astype(jnp.float32)
    row_sq = jnp.sum(xr32 * xr32, axis=1, keepdims=True)                     # (TM, 1)
    ones_row = jnp.ones((1, xc.shape[1]), dtype=jnp.float32)
    col_sq = lax.dot_general(ones_row, xc32 * xc32, dn,
                             preferred_element_type=jnp.float32)             # (1, TN)

    dist = jnp.maximum(row_sq + col_sq - 2.0 * gram, 0.0)                    # (TM, TN)

    same = spk_row_ref[...] == spk_col_ref[...]                              # (TM, TN) bool
    pos_masked = jnp.where(same, dist, 0.0)     # == dist * pos_mask  (dist >= 0)
    neg_masked = jnp.where(same, 0.0, dist)     # == dist * neg_mask

    post_ref[...] = jnp.maximum(post_ref[...],
                                jnp.max(pos_masked, axis=1, keepdims=True))
    nega_ref[...] = jnp.minimum(nega_ref[...],
                                jnp.min(neg_masked, axis=1, keepdims=True))

    @pl.when(j == pl.num_programs(1) - 1)
    def _finalize():
        out_ref[...] = jnp.maximum(margin + post_ref[...] - nega_ref[...], 0.0)


def _choose_tile(n, preferred, align):
    """Largest tile <= preferred that divides n and is a multiple of align."""
    if n <= preferred:
        return n
    t = (preferred // align) * align
    while t >= align:
        if n % t == 0:
            return t
        t -= align
    return n  # fall back to a single block along this axis


def batch_hard_triplet_margin_loss(embedding, spk, margin=1.0):
    """Pallas wrapper. embedding: (N, D) float (f32 or bf16), spk: (N,) int labels."""
    embedding = jnp.asarray(embedding)
    n, d = embedding.shape
    spk = jnp.asarray(spk, dtype=jnp.int32)
    spk_col = spk.reshape(n, 1)     # (N, 1) - compared against ...
    spk_row = spk.reshape(1, n)     # (1, N) - ... to build the mask in-kernel

    tm = _choose_tile(n, 256, 8)     # row tile (sublane-aligned)
    tn = _choose_tile(n, 512, 128)   # column tile (lane-aligned)
    grid = (n // tm, n // tn)        # reduction (column) axis last

    kernel = functools.partial(_batch_hard_kernel, margin=float(margin))
    per_row = pl.pallas_call(
        kernel,
        out_shape=jax.ShapeDtypeStruct((n, 1), jnp.float32),
        grid=grid,
        in_specs=[
            pl.BlockSpec((tm, d), lambda i, j: (i, 0)),   # row block of embeddings
            pl.BlockSpec((tn, d), lambda i, j: (j, 0)),   # column block of embeddings
            pl.BlockSpec((tm, 1), lambda i, j: (i, 0)),   # spk for rows
            pl.BlockSpec((1, tn), lambda i, j: (0, j)),   # spk for columns
        ],
        out_specs=pl.BlockSpec((tm, 1), lambda i, j: (i, 0)),
        scratch_shapes=[
            pltpu.VMEM((tm, 1), jnp.float32),   # running max over positives
            pltpu.VMEM((tm, 1), jnp.float32),   # running min over negatives
        ],
        compiler_params=pltpu.CompilerParams(
            dimension_semantics=("parallel", "arbitrary"),
            vmem_limit_bytes=64 * 1024 * 1024,
        ),
    )(embedding, embedding, spk_col, spk_row)

    return jnp.mean(per_row)


def reference_loss(embedding, spk, margin=1.0):
    """Pure-JAX reference mirroring the PyTorch forward."""
    x = embedding.astype(jnp.float32)
    x_norm = jnp.sum(x * x, axis=1, keepdims=True)
    dist = jnp.clip(x_norm + x_norm.T - 2.0 * (x @ x.T), 0.0, None)
    spk = jnp.asarray(spk, dtype=jnp.int32).reshape(-1, 1)
    pos = (spk == spk.T).astype(jnp.float32)
    neg = 1.0 - pos
    post = jnp.max(dist * pos, axis=1)
    nega = jnp.min(dist * neg, axis=1)
    return jnp.mean(jax.nn.relu(margin + post - nega))


if __name__ == "__main__":
    key = jax.random.PRNGKey(0)
    k1, k2 = jax.random.split(key)

    # Small test (single block, grid=(1, 1)).
    N, D = 8, 32
    embedding = jax.random.normal(k1, (N, D), dtype=jnp.float32)
    spk = jnp.array([0, 0, 1, 1, 2, 2, 3, 3], dtype=jnp.int32)
    loss = jax.block_until_ready(batch_hard_triplet_margin_loss(embedding, spk, margin=1.0))
    ref = jax.block_until_ready(reference_loss(embedding, spk, margin=1.0))
    assert jnp.allclose(loss, ref, rtol=1e-5, atol=1e-5), (loss, ref)

    # Moderate test exercising the tiled flash-style path (grid=(4, 2)).
    N2, D2 = 1024, 64
    embedding2 = jax.random.normal(k2, (N2, D2), dtype=jnp.float32)
    spk2 = jnp.arange(N2, dtype=jnp.int32) // 8
    loss2 = jax.block_until_ready(batch_hard_triplet_margin_loss(embedding2, spk2, margin=1.0))
    ref2 = jax.block_until_ready(reference_loss(embedding2, spk2, margin=1.0))
    assert jnp.allclose(loss2, ref2, rtol=1e-3, atol=1e-3), (loss2, ref2)

    print("KERNEL_OK")
</pallas_src>

<mosaic_0001>
module attributes {stable_mosaic.version = 11 : i64} {
  func.func @_batch_hard_kernel(%arg0: i32, %arg1: i32, %arg2: memref<8x32xf32, #tpu.memory_space<vmem>>, %arg3: memref<8x32xf32, #tpu.memory_space<vmem>>, %arg4: memref<8x1xi32, #tpu.memory_space<vmem>>, %arg5: memref<1x8xi32, #tpu.memory_space<vmem>>, %arg6: memref<8x1xf32, #tpu.memory_space<vmem>>, %arg7: memref<8x1xf32, #tpu.memory_space<vmem>>, %arg8: memref<8x1xf32, #tpu.memory_space<vmem>>) attributes {dimension_semantics = [#tpu.dimension_semantics<parallel>, #tpu.dimension_semantics<arbitrary>], iteration_bounds = array<i64: 1, 1>, scalar_prefetch = 0 : i64, scratch_operands = 2 : i64, tpu.core_type = #tpu.core_type<tc>, window_params = [{transform_indices = @transform_0, window_bounds = array<i64: 8, 32>}, {transform_indices = @transform_1, window_bounds = array<i64: 8, 32>}, {transform_indices = @transform_2, window_bounds = array<i64: 8, 1>}, {transform_indices = @transform_3, window_bounds = array<i64: 1, 8>}, {transform_indices = @transform_4, window_bounds = array<i64: 8, 1>}]} {
    %c0_i32 = arith.constant 0 : i32
    %0 = arith.cmpi eq, %arg1, %c0_i32 : i32
    %1 = arith.extui %0 : i1 to i32
    %c0_i32_0 = arith.constant 0 : i32
    %2 = arith.cmpi ne, %1, %c0_i32_0 : i32
    scf.if %2 {
      %cst_27 = arith.constant 0.000000e+00 : f32
      %42 = vector.broadcast %cst_27 : f32 to vector<8x1xf32>
      %c0_28 = arith.constant 0 : index
      %c0_29 = arith.constant 0 : index
      %43 = vector.load %arg7[%c0_28, %c0_29] : memref<8x1xf32, #tpu.memory_space<vmem>>, vector<8x1xf32>
      tpu.vector_store %arg7[%c0_28, %c0_29], %42 {strides = array<i32>} : memref<8x1xf32, #tpu.memory_space<vmem>>, vector<8x1xf32>,
      %cst_30 = arith.constant 0x7F800000 : f32
      %44 = vector.broadcast %cst_30 : f32 to vector<8x1xf32>
      %c0_31 = arith.constant 0 : index
      %c0_32 = arith.constant 0 : index
      %45 = vector.load %arg8[%c0_31, %c0_32] : memref<8x1xf32, #tpu.memory_space<vmem>>, vector<8x1xf32>
      tpu.vector_store %arg8[%c0_31, %c0_32], %44 {strides = array<i32>} : memref<8x1xf32, #tpu.memory_space<vmem>>, vector<8x1xf32>,
    } else {
    }
    %c0 = arith.constant 0 : index
    %c0_1 = arith.constant 0 : index
    %3 = vector.load %arg2[%c0, %c0_1] : memref<8x32xf32, #tpu.memory_space<vmem>>, vector<8x32xf32>
    %c0_2 = arith.constant 0 : index
    %c0_3 = arith.constant 0 : index
    %4 = vector.load %arg3[%c0_2, %c0_3] : memref<8x32xf32, #tpu.memory_space<vmem>>, vector<8x32xf32>
    %cst = arith.constant dense<0.000000e+00> : vector<8x8xf32>
    %5 = tpu.matmul %3, %4, %cst {dimension_numbers = #tpu.dot_dimension_numbers<[1], [1], [0], [0], [0, 0, 1, 0], [], []>} : vector<8x32xf32>, vector<8x32xf32>, vector<8x8xf32> -> vector<8x8xf32>
    %6 = arith.mulf %3, %3 : vector<8x32xf32>
    %cst_4 = arith.constant dense<0.000000e+00> : vector<8xf32>
    %7 = vector.multi_reduction <add>, %6, %cst_4 [1] : vector<8x32xf32> to vector<8xf32>
    %8 = vector.shape_cast %7 : vector<8xf32> to vector<8x1xf32>
    %cst_5 = arith.constant 1.000000e+00 : f32
    %9 = vector.broadcast %cst_5 : f32 to vector<1x32xf32>
    %10 = arith.mulf %4, %4 : vector<8x32xf32>
    %cst_6 = arith.constant dense<0.000000e+00> : vector<1x8xf32>
    %11 = tpu.matmul %9, %10, %cst_6 {dimension_numbers = #tpu.dot_dimension_numbers<[1], [1], [0], [0], [0, 0, 1, 0], [], []>} : vector<1x32xf32>, vector<8x32xf32>, vector<1x8xf32> -> vector<1x8xf32>
    %12 = vector.broadcast %8 : vector<8x1xf32> to vector<8x8xf32>
    %13 = vector.broadcast %11 : vector<1x8xf32> to vector<8x8xf32>
    %14 = arith.addf %12, %13 : vector<8x8xf32>
    %cst_7 = arith.constant 2.000000e+00 : f32
    %15 = vector.broadcast %cst_7 : f32 to vector<8x8xf32>
    %16 = arith.mulf %15, %5 : vector<8x8xf32>
    %17 = arith.subf %14, %16 : vector<8x8xf32>
    %cst_8 = arith.constant 0.000000e+00 : f32
    %18 = vector.broadcast %cst_8 : f32 to vector<8x8xf32>
    %19 = arith.maximumf %17, %18 : vector<8x8xf32>
    %c0_9 = arith.constant 0 : index
    %c0_10 = arith.constant 0 : index
    %20 = vector.load %arg4[%c0_9, %c0_10] : memref<8x1xi32, #tpu.memory_space<vmem>>, vector<8x1xi32>
    %c0_11 = arith.constant 0 : index
    %c0_12 = arith.constant 0 : index
    %21 = vector.load %arg5[%c0_11, %c0_12] : memref<1x8xi32, #tpu.memory_space<vmem>>, vector<1x8xi32>
    %22 = vector.broadcast %20 : vector<8x1xi32> to vector<8x8xi32>
    %23 = vector.broadcast %21 : vector<1x8xi32> to vector<8x8xi32>
    %24 = arith.cmpi eq, %22, %23 : vector<8x8xi32>
    %cst_13 = arith.constant 0.000000e+00 : f32
    %25 = vector.broadcast %cst_13 : f32 to vector<8x8xf32>
    %26 = arith.select %24, %19, %25 : vector<8x8xi1>, vector<8x8xf32>
    %cst_14 = arith.constant 0.000000e+00 : f32
    %27 = vector.broadcast %cst_14 : f32 to vector<8x8xf32>
    %28 = arith.select %24, %27, %19 : vector<8x8xi1>, vector<8x8xf32>
    %c0_15 = arith.constant 0 : index
    %c0_16 = arith.constant 0 : index
    %29 = vector.load %arg7[%c0_15, %c0_16] : memref<8x1xf32, #tpu.memory_space<vmem>>, vector<8x1xf32>
    %cst_17 = arith.constant dense<0xFF800000> : vector<8xf32>
    %30 = vector.multi_reduction <maximumf>, %26, %cst_17 [1] : vector<8x8xf32> to vector<8xf32>
    %31 = vector.shape_cast %30 : vector<8xf32> to vector<8x1xf32>
    %32 = arith.maximumf %29, %31 : vector<8x1xf32>
    %c0_18 = arith.constant 0 : index
    %c0_19 = arith.constant 0 : index
    %33 = vector.load %arg7[%c0_18, %c0_19] : memref<8x1xf32, #tpu.memory_space<vmem>>, vector<8x1xf32>
    tpu.vector_store %arg7[%c0_18, %c0_19], %32 {strides = array<i32>} : memref<8x1xf32, #tpu.memory_space<vmem>>, vector<8x1xf32>,
    %c0_20 = arith.constant 0 : index
    %c0_21 = arith.constant 0 : index
    %34 = vector.load %arg8[%c0_20, %c0_21] : memref<8x1xf32, #tpu.memory_space<vmem>>, vector<8x1xf32>
    %cst_22 = arith.constant dense<0x7F800000> : vector<8xf32>
    %35 = vector.multi_reduction <minimumf>, %28, %cst_22 [1] : vector<8x8xf32> to vector<8xf32>
    %36 = vector.shape_cast %35 : vector<8xf32> to vector<8x1xf32>
    %37 = arith.minimumf %34, %36 : vector<8x1xf32>
    %c0_23 = arith.constant 0 : index
    %c0_24 = arith.constant 0 : index
    %38 = vector.load %arg8[%c0_23, %c0_24] : memref<8x1xf32, #tpu.memory_space<vmem>>, vector<8x1xf32>
    tpu.vector_store %arg8[%c0_23, %c0_24], %37 {strides = array<i32>} : memref<8x1xf32, #tpu.memory_space<vmem>>, vector<8x1xf32>,
    %c0_i32_25 = arith.constant 0 : i32
    %39 = arith.cmpi eq, %arg1, %c0_i32_25 : i32
    %40 = arith.extui %39 : i1 to i32
    %c0_i32_26 = arith.constant 0 : i32
    %41 = arith.cmpi ne, %40, %c0_i32_26 : i32
    scf.if %41 {
      %c0_27 = arith.constant 0 : index
      %c0_28 = arith.constant 0 : index
      %42 = vector.load %arg7[%c0_27, %c0_28] : memref<8x1xf32, #tpu.memory_space<vmem>>, vector<8x1xf32>
      %cst_29 = arith.constant 1.000000e+00 : f32
      %43 = vector.broadcast %cst_29 : f32 to vector<8x1xf32>
      %44 = arith.addf %43, %42 : vector<8x1xf32>
      %c0_30 = arith.constant 0 : index
      %c0_31 = arith.constant 0 : index
      %45 = vector.load %arg8[%c0_30, %c0_31] : memref<8x1xf32, #tpu.memory_space<vmem>>, vector<8x1xf32>
      %46 = arith.subf %44, %45 : vector<8x1xf32>
      %cst_32 = arith.constant 0.000000e+00 : f32
      %47 = vector.broadcast %cst_32 : f32 to vector<8x1xf32>
      %48 = arith.maximumf %46, %47 : vector<8x1xf32>
      %c0_33 = arith.constant 0 : index
      %c0_34 = arith.constant 0 : index
      %49 = vector.load %arg6[%c0_33, %c0_34] : memref<8x1xf32, #tpu.memory_space<vmem>>, vector<8x1xf32>
      tpu.vector_store %arg6[%c0_33, %c0_34], %48 {strides = array<i32>} : memref<8x1xf32, #tpu.memory_space<vmem>>, vector<8x1xf32>,
    } else {
    }
    return
  }
  func.func @transform_0(%arg0: i32, %arg1: i32) -> (i32, i32) {
    %c0_i32 = arith.constant 0 : i32
    %c0_i32_0 = arith.constant 0 : i32
    return %arg0, %c0_i32 : i32, i32
  }
  func.func @transform_1(%arg0: i32, %arg1: i32) -> (i32, i32) {
    %c0_i32 = arith.constant 0 : i32
    %c0_i32_0 = arith.constant 0 : i32
    return %arg1, %c0_i32 : i32, i32
  }
  func.func @transform_2(%arg0: i32, %arg1: i32) -> (i32, i32) {
    %c0_i32 = arith.constant 0 : i32
    %c0_i32_0 = arith.constant 0 : i32
    return %arg0, %c0_i32 : i32, i32
  }
  func.func @transform_3(%arg0: i32, %arg1: i32) -> (i32, i32) {
    %c0_i32 = arith.constant 0 : i32
    %c0_i32_0 = arith.constant 0 : i32
    return %c0_i32, %arg1 : i32, i32
  }
  func.func @transform_4(%arg0: i32, %arg1: i32) -> (i32, i32) {
    %c0_i32 = arith.constant 0 : i32
    %c0_i32_0 = arith.constant 0 : i32
    return %arg0, %c0_i32 : i32, i32
  }
}

</mosaic_0001>

<bundles_post_ra>
// kernel: tpu_custom_call.1
= control target key start
LH: loop header
LB: loop body
LE: loop exit
PB: predicated region body
PF: predicated region fallthrough
CT: control target
= control target key end

     0   :  { %9 = vsyncpa [#allocation5], 0  ;;  %s540_s0 = inlined_call_operand.hbm [shape: f32[8,32], index: 0, kind: input, shape index: {}]   ;;  %s541_s1 = inlined_call_operand.hbm [shape: f32[8,32], index: 1, kind: input, shape index: {}]   ;;  %s542_s2 = inlined_call_operand.hbm [shape: s32[8,1], index: 2, kind: input, shape index: {}]   ;;  %s543_s3 = inlined_call_operand.hbm [shape: s32[1,8], index: 3, kind: input, shape index: {}]   ;;  %s544_s4 = inlined_call_operand.hbm [shape: f32[8,1], index: 4, kind: output, shape index: {}]  }
   0x1   :  { %10 = vsyncpa [#allocation8], 0 }
   0x2   :  { %11 = vsyncpa [#allocation11], 0 }
   0x3   :  { %12 = vsyncpa [#allocation6], 0  ;;  %s440_s15 = smov [#allocation7]   ;;  %s441_s17 = smov [#allocation4]  }
   0x4   :  { %s29_s16 = sshll.u32 %s440_s15, 4  ;;  %s19_s18 = sshll.u32 %s441_s17, 4  ;;  %s30_s16 = int_to_ptr.vmem [resolvable:$true] %s29_s16  ;;  %s20_s18 = int_to_ptr.vmem [resolvable:$true] %s19_s18 }
   0x5   :  { %s322_s21 = scalar_lea.hbm %s541_s1, 128 }
   0x6   :  { %p323_p0 = scmp.ne.s32.totalorder %s541_s1, %s322_s21  ;;  %p326_p1 = scmp.lt.u32.totalorder %s322_s21, %s541_s1 }
   0x8   :  { %p328_p2 = pnand %p326_p1, %p323_p0 }
   0xa   :  { %331 = shalt.err (!%p328_p2)
}
   0xb   :  { %s332_s26 = scalar_lea.vmem %s30_s16, 128  ;;  %p337_p4 = scmp.lt.s32.totalorder %s30_s16, %s30_s16 }
   0xc   :  { %p333_p3 = scmp.ne.s32.totalorder %s30_s16, %s332_s26  ;;  %p338_p5 = scmp.lt.s32.totalorder %s332_s26, %s332_s26 }
   0xe   :  { %p339_p6 = por %p338_p5, %p337_p4 }
  0x10   :  { %p340_p7 = pnand %p339_p6, %p333_p3 }
  0x12   :  { %343 = shalt.err (!%p340_p7)
}
  0x13   :  { %32 = dma.hbm_to_vmem [thread:$0]  %s541_s1, 128, %s30_s16, [#allocation8]  }
  0x14   :  { %s344_s5 = scalar_lea.hbm %s540_s0, 128 }
  0x15   :  { %p345_p8 = scmp.ne.s32.totalorder %s540_s0, %s344_s5  ;;  %p348_p9 = scmp.lt.u32.totalorder %s344_s5, %s540_s0 }
  0x17   :  { %p350_p10 = pnand %p348_p9, %p345_p8 }
  0x19   :  { %353 = shalt.err (!%p350_p10)
}
  0x1a   :  { %s354_s10 = scalar_lea.vmem %s20_s18, 128  ;;  %p359_p12 = scmp.lt.s32.totalorder %s20_s18, %s20_s18 }
  0x1b   :  { %p355_p11 = scmp.ne.s32.totalorder %s20_s18, %s354_s10  ;;  %p360_p13 = scmp.lt.s32.totalorder %s354_s10, %s354_s10 }
  0x1d   :  { %p361_p0 = por %p360_p13, %p359_p12 }
  0x1f   :  { %p362_p1 = pnand %p361_p0, %p355_p11 }
  0x21   :  { %365 = shalt.err (!%p362_p1)
}
  0x22   :  { %22 = dma.hbm_to_vmem [thread:$0]  %s540_s0, 128, %s20_s18, [#allocation5]  }
  0x23   :  { %s442_s12 = smov [#allocation9]   ;;  %s443_s14 = smov [#allocation10]  }
  0x24   :  { %s39_s13 = sshll.u32 %s442_s12, 4  ;;  %s49_s15 = sshll.u32 %s443_s14, 4  ;;  %s40_s13 = int_to_ptr.vmem [resolvable:$true] %s39_s13  ;;  %s50_s15 = int_to_ptr.vmem [resolvable:$true] %s49_s15 }
  0x25   :  { %s366_s19 = scalar_lea.hbm %s542_s2, 128 }
  0x26   :  { %p367_p2 = scmp.ne.s32.totalorder %s542_s2, %s366_s19  ;;  %p370_p3 = scmp.lt.u32.totalorder %s366_s19, %s542_s2 }
  0x28   :  { %p372_p4 = pnand %p370_p3, %p367_p2 }
  0x2a   :  { %375 = shalt.err (!%p372_p4)
}
  0x2b   :  { %s376_s0 = scalar_lea.vmem %s40_s13, 128  ;;  %p381_p6 = scmp.lt.s32.totalorder %s40_s13, %s40_s13 }
  0x2c   :  { %p377_p5 = scmp.ne.s32.totalorder %s40_s13, %s376_s0  ;;  %p382_p7 = scmp.lt.s32.totalorder %s376_s0, %s376_s0 }
  0x2e   :  { %p383_p8 = por %p382_p7, %p381_p6 }
  0x30   :  { %p384_p9 = pnand %p383_p8, %p377_p5 }
  0x32   :  { %387 = shalt.err (!%p384_p9)
}
  0x33   :  { %42 = dma.hbm_to_vmem [thread:$0]  %s542_s2, 128, %s40_s13, [#allocation8]  }
  0x34   :  { %s388_s27 = scalar_lea.hbm %s543_s3, 16 }
  0x35   :  { %p389_p10 = scmp.ne.s32.totalorder %s543_s3, %s388_s27  ;;  %p392_p11 = scmp.lt.u32.totalorder %s388_s27, %s543_s3 }
  0x37   :  { %p394_p12 = pnand %p392_p11, %p389_p10 }
  0x39   :  { %397 = shalt.err (!%p394_p12)
}
  0x3a   :  { %s398_s6 = scalar_lea.vmem %s50_s15, 16  ;;  %s402_s7 = scalar_lea.vmem %s50_s15, 32 }
  0x3b   :  { %p399_p13 = scmp.ne.s32.totalorder %s50_s15, %s398_s6  ;;  %p403_p0 = scmp.lt.s32.totalorder %s50_s15, %s50_s15 }
  0x3c   :  { %p404_p1 = scmp.lt.s32.totalorder %s402_s7, %s398_s6 }
  0x3e   :  { %p405_p2 = por %p404_p1, %p403_p0 }
  0x40   :  { %p406_p3 = pnand %p405_p2, %p399_p13 }
  0x42   :  { %409 = shalt.err (!%p406_p3)
}
  0x43   :  { %52 = dma.hbm_to_vmem [thread:$0]  %s543_s3, 16, %s50_s15, [#allocation11]  }
  0x44   :  { %432 = dma.done.wait [#allocation5], 128  }
  0x45   :  { %433 = vsyncadd [#allocation5], 4294967168 }
  0x46   :  { %434 = dma.done.wait [#allocation8], 256  }
  0x47   :  { %435 = vsyncadd [#allocation8], 4294967040 }
  0x48   :  { %436 = dma.done.wait [#allocation11], 16  }
  0x49   :  { %437 = vsyncadd [#allocation11], 4294967280  ;;  %v444_v0 = vmov 0.0   ;;  %vm445_vm0 = vmmov 0   ;;  %v446_v1 = vmov 0   ;;  %vm74_vm1 = vcmask 261120  }
  0x4a   :  { %306 = vmatprep.subr.mxu1 %v444_v0  ;;  %301 = vmatprep.subr.mxu0 %v444_v0  ;;  %v73_v2 = vld [vmem:[#allocation7] sm:$0xff]  ;;  %v72_v3 = vld [vmem:[#allocation4] sm:$0xff]  ;;  %v447_v7 = vmov 1.0   ;;  %v240_v8 = vld [vmem:[#allocation9] sm:$0xff]  ;;  %vm69_vm2 = vcmask 7168   ;;  %v232_v9 = vlaneseq  ;;  %vm253_vm4 = vcmask 64512  }
  0x4b   :  { %308 = vmatprep.mubr.msk.f32.mxu1 %vm445_vm0, %v444_v0  ;;  %303 = vmatprep.mubr.msk.f32.mxu0 %vm445_vm0, %v444_v0  ;;  %v155_v4 = vmul.f32 %v73_v2, %v73_v2  ;;  %v151_v5 = vmul.f32 %v72_v3, %v72_v3  ;;  %70 = vst.msk [vmem:[#allocation2] sm:$0xff] %vm69_vm2, %v444_v0  ;;  %v296_v20 = vld [vmem:[#allocation10] ss:$0 sm:$0xff]  ;;  %v448_v28 = vmov inf   ;;  %s449_s3 = smov [#allocation12]  }
  0x4c   :  { %321 = vset.pattern.permute.xlu0 %v446_v1  ;;  %302 = vmatpush3.xpose.msk.msra.mxu0 %vm74_vm1, %v73_v2  ;;  %v233_v10 = vshrl.u32 %v232_v9, 7  ;;  %71 = vst.msk [vmem:[#allocation3] sm:$0xff] %vm69_vm2, %v448_v28  ;;  %s281_s9 = sshll.u32 %s449_s3, 4  ;;  %s282_s9 = int_to_ptr.vmem [resolvable:$true] %s281_s9 }
  0x4d   :  { %307 = vmatpush3.xpose.msk.msra.mxu1 %vm74_vm1, %v155_v4  ;;  %v152_v6 = vsel %vm74_vm1, %v151_v5, 0.0  ;;  %s410_s10 = scalar_lea.vmem %s282_s9, 128  ;;  %p415_p5 = scmp.lt.s32.totalorder %s282_s9, %s282_s9 }
  0x4e   :  { %153 = vadd.xlane.f32.xlu0 %v152_v6  ;;  %v234_v11 = vsub.s32 0, %v233_v10  ;;  %p411_p4 = scmp.ne.s32.totalorder %s282_s9, %s410_s10  ;;  %p416_p6 = scmp.lt.s32.totalorder %s410_s10, %s410_s10 }
  0x4f   :  { %304 = vmatmul.mubr.msk.f32.vlgmr.msra.gmra.mrb[0].mxu0 %vm74_vm1, %v72_v3 }
  0x50   :  { %309 = vmatmul.mubr.msk.f32.vlgmr.msra.gmra.mrb[0].mxu1 %vm74_vm1, %v447_v7  ;;  %p417_p7 = por %p416_p6, %p415_p5 }
  0x52   :  { %v252_v29 = vld [vmem:[#allocation2] sm:$0xff]  ;;  %p418_p8 = pnand %p417_p7, %p411_p4 }
  0x53   :  { %v260_v32 = vld [vmem:[#allocation3] sm:$0xff] }
  0x64   :  { %243 = vperm.xlu0 %321, %v240_v8  }
  0xdb   :  { %v154_v13 = vpop.xlane.xlu0 %153 }
  0xe3   :  { %v244_v21 = vpop.permute.xlu0 %243 }
  0xe4   :  { %vm249_vm3 = vcmp.eq.s32.totalorder %v244_v21, %v296_v20 }
 0x122   :  { %v147_v12 = vpop.f32.mrb[0].mxu0 }
 0x123   :  { %v305_v14 = vpop.f32.mrb[1].mxu0  ;;  %v228_v15 = vpop.f32.mrb[0].mxu1  ;;  %v237_v17 = vmul.f32 2.0, %v147_v12 }
 0x124   :  { %v235_v16 = vrot.slane %v228_v15, %v234_v11  ;;  %v310_v18 = vpop.f32.mrb[1].mxu1 }
 0x126   :  { %v236_v19 = vadd.f32 %v235_v16, %v154_v13 }
 0x128   :  { %v238_v22 = vsub.f32 %v236_v19, %v237_v17 }
 0x12a   :  { %v239_v23 = vmax.f32 %v238_v22, 0.0 }
 0x12c   :  { %v250_v24 = vsel %vm249_vm3, %v239_v23, 0.0  ;;  %v251_v26 = vsel %vm249_vm3, 0.0, %v239_v23 }
 0x12d   :  { %v254_v25 = vsel %vm253_vm4, %v250_v24, -inf  ;;  %v261_v27 = vsel %vm253_vm4, %v251_v26, inf }
 0x12e   :  { %255 = vmax.xlane.f32.xlu1 %v254_v25 }
 0x132   :  { %262 = vmin.xlane.f32.xlu1 %v261_v27 }
 0x1bb   :  { %v256_v30 = vpop.xlane.xlu1 %255 }
 0x1bc   :  { %v257_v31 = vmax.f32 %v252_v29, %v256_v30 }
 0x1be   :  { %259 = vst.msk [vmem:[#allocation2] sm:$0xff] %vm69_vm2, %v257_v31 }
 0x1bf   :  { %v263_v33 = vpop.xlane.xlu1 %262 }
 0x1c0   :  { %v264_v34 = vmin.f32 %v260_v32, %v263_v33 }
 0x1c2   :  { %265 = vst.msk [vmem:[#allocation3] sm:$0xff] %vm69_vm2, %v264_v34 }
 0x1c5   :  { %v269_v35 = vld [vmem:[#allocation2] sm:$0xff] }
 0x1c6   :  { %v270_v36 = vadd.f32 1.0, %v269_v35 }
 0x1c9   :  { %v271_v37 = vld [vmem:[#allocation3] sm:$0xff] }
 0x1ca   :  { %v272_v38 = vsub.f32 %v270_v36, %v271_v37 }
 0x1cc   :  { %v273_v39 = vmax.f32 %v272_v38, 0.0 }
 0x1ce   :  { %274 = vst.msk [vmem:[#allocation12] sm:$0xff] %vm69_vm2, %v273_v39 }
 0x1cf   :  { %421 = shalt.err (!%p418_p8)
}
 0x1d0   :  { %s422_s12 = scalar_lea.hbm %s544_s4, 128 }
 0x1d1   :  { %p423_p9 = scmp.ne.s32.totalorder %s544_s4, %s422_s12  ;;  %p426_p10 = scmp.lt.u32.totalorder %s422_s12, %s544_s4 }
 0x1d3   :  { %p428_p11 = pnand %p426_p10, %p423_p9 }
 0x1d5   :  { %431 = shalt.err (!%p428_p11)
}
 0x1d6   :  { %284 = dma.vmem_to_hbm [thread:$0]  %s282_s9, 128, %s544_s4, [#allocation6]  }
 0x1d7   :  { %438 = dma.done.wait [#allocation6], 128  }
 0x1d8   :  { %439 = vsyncadd [#allocation6], 4294967168 }
 0x1d9   :  { %288 = vsyncpa [#allocation5], 1 }
 0x1da   :  { %289 = vsyncpa [#allocation8], 1 }
 0x1db   :  { %290 = vsyncpa [#allocation11], 1 }
 0x1dc   :  { %291 = vsyncpa [#allocation6], 1 }

</bundles_post_ra>
